<compile_context>
chip_gen: v7x
topology: tpu7x:2x2x1
jax: 0.10.0
libtpu: 0.0.40
codegen_flags: <defaults>
</compile_context>

<pallas_src>
import functools

import jax
import jax.numpy as jnp
from jax import lax
from jax.experimental import pallas as pl
from jax.experimental.pallas import tpu as pltpu


LANES = 128
MAX_TILE_ROWS = 1024  # 1024*128 px/tile; 2 f32 outputs double-buffered ~= 6.3 MiB VMEM


def _camera_ray_kernel(pose_ref, tstart_ref, rays_d_ref, view_ref, *,
                       tile_rows, inv_w, width_f, cx, cy, inv_fx, inv_fy):
    # pose_ref   : SMEM (N*12,) f32   -- flattened row-major Rt matrices
    # tstart_ref : SMEM (2*T,)  f32   -- per-tile (start_h, start_w) in pixels
    # rays_d_ref : VMEM (3, TR, 128) f32  (batch dim squeezed by BlockSpec)
    # view_ref   : VMEM (3, TR, 128) f32
    n = pl.program_id(0)
    t = pl.program_id(1)
    base = n * 12
    start_h = tstart_ref[2 * t]
    start_w = tstart_ref[2 * t + 1]

    # Generate camera-frame directions on the fly (no HBM input stream).
    # Local pixel offset inside this tile, as exact float32 integers.
    p_local = (lax.broadcasted_iota(jnp.int32, (tile_rows, LANES), 0) * LANES
               + lax.broadcasted_iota(jnp.int32, (tile_rows, LANES), 1)
               ).astype(jnp.float32)
    q = start_w + p_local                       # column index before wrap (exact int)
    # wraps == (start_w + p_local) // W ; the +0.5 gives ~2^-18 relative slack,
    # so reciprocal-multiply rounding can never flip the floor.
    wraps = jnp.floor((q + 0.5) * inv_w)
    w_pix = q - wraps * width_f                 # exact: difference of exact ints
    h_pix = start_h + wraps
    dx = (w_pix - cx) * inv_fx
    dy = (cy - h_pix) * inv_fy                  # == -(h - cy)/fy ; dz == -1

    # rays_d[r] = R[r,0]*dx + R[r,1]*dy - R[r,2]  (scalar-broadcast VPU FMAs)
    d0 = pose_ref[base + 0] * dx + pose_ref[base + 1] * dy - pose_ref[base + 2]
    d1 = pose_ref[base + 4] * dx + pose_ref[base + 5] * dy - pose_ref[base + 6]
    d2 = pose_ref[base + 8] * dx + pose_ref[base + 9] * dy - pose_ref[base + 10]

    rays_d_ref[0] = d0
    rays_d_ref[1] = d1
    rays_d_ref[2] = d2

    # view_dirs = rays_d * rsqrt(|rays_d|^2)   (EUP rsqrt, no divides)
    inv = lax.rsqrt(d0 * d0 + d1 * d1 + d2 * d2)
    view_ref[0] = d0 * inv
    view_ref[1] = d1 * inv
    view_ref[2] = d2 * inv


def camera_ray_generator(camera_poses, height, width, focal_x, focal_y,
                         center_x=None, center_y=None):
    """Pallas implementation of pynif3d CameraRayGenerator.forward."""
    H, W = int(height), int(width)
    if center_x is None:
        center_x = 0.5 * W
    if center_y is None:
        center_y = 0.5 * H

    camera_poses = jnp.asarray(camera_poses, dtype=jnp.float32)
    assert camera_poses.ndim in (2, 3) and camera_poses.shape[-2:] == (3, 4)
    if camera_poses.ndim == 2:
        camera_poses = camera_poses[None, ...]
    N = camera_poses.shape[0]
    pose_flat = camera_poses.reshape(N * 12)    # 1D SMEM: no 128-col padding

    # ---- tile geometry -----------------------------------------------------
    P = H * W
    rows = -(-P // LANES)
    rows8 = ((rows + 7) // 8) * 8
    cap = min(MAX_TILE_ROWS, rows8)

    # Largest multiple-of-8 divisor of rows8 that is <= cap; use it if it is
    # not pathologically small, otherwise fall back to the padded cap.
    tile_rows = cap
    d = cap - cap % 8
    while d >= 8:
        if rows8 % d == 0:
            if d >= max(8, cap // 4):
                tile_rows = d
            break
        d -= 8

    num_tiles = -(-rows8 // tile_rows)
    # v7x megacore: make sure the parallel grid has at least 2 steps.
    if N * num_tiles < 2 and tile_rows % 16 == 0:
        tile_rows //= 2
        num_tiles *= 2
    rows_pad = num_tiles * tile_rows
    P_pad = rows_pad * LANES

    # Exactness of the in-kernel float row/col recovery requires local pixel
    # offsets (start_w + tile_rows*128) to stay well below 2^23.
    assert W + tile_rows * LANES < (1 << 23)

    # Per-tile (start_h, start_w), flattened to 1D f32 SMEM.
    tstart = []
    for t in range(num_tiles):
        s = t * tile_rows * LANES
        tstart += [float(s // W), float(s % W)]
    tstart = jnp.asarray(tstart, dtype=jnp.float32)

    kernel = functools.partial(
        _camera_ray_kernel,
        tile_rows=tile_rows,
        inv_w=float(1.0 / W), width_f=float(W),
        cx=float(center_x), cy=float(center_y),
        inv_fx=float(1.0 / focal_x), inv_fy=float(1.0 / focal_y))

    out_sds = jax.ShapeDtypeStruct((N, 3, rows_pad, LANES), jnp.float32)
    out_spec = pl.BlockSpec((None, 3, tile_rows, LANES), lambda n, t: (n, 0, t, 0))

    grid_spec = pltpu.PrefetchScalarGridSpec(
        num_scalar_prefetch=0,
        grid=(N, num_tiles),
        in_specs=[
            pl.BlockSpec(memory_space=pltpu.MemorySpace.SMEM),   # pose_flat (N*12,)
            pl.BlockSpec(memory_space=pltpu.MemorySpace.SMEM),   # tile starts (2*T,)
        ],
        out_specs=[out_spec, out_spec],                          # rays_d, view_dirs
    )

    rays_d_p, view_p = pl.pallas_call(
        kernel,
        out_shape=(out_sds, out_sds),
        grid_spec=grid_spec,
        compiler_params=pltpu.CompilerParams(
            dimension_semantics=("parallel", "parallel")),
    )(pose_flat, tstart)

    def _unflatten(x):
        # (N, 3, rows_pad, 128) has the same contiguous bytes as (N, 3, P_pad).
        flat = x.reshape(N, 3, P_pad)
        if P_pad != P:
            flat = flat[:, :, :P]   # crop copy only when padding exists
        return flat.reshape(N, 3, H, W)

    rays_d = _unflatten(rays_d_p)
    view_dirs = _unflatten(view_p)
    # rays_o is a pure broadcast of the translation column: no kernel writes.
    rays_o = jnp.broadcast_to(camera_poses[:, :, 3][:, :, None, None],
                              (N, 3, H, W))
    return rays_o, rays_d, view_dirs


if __name__ == "__main__":
    key = jax.random.PRNGKey(0)

    # Small, non-square shapes (checks the meshgrid(W, H) axis convention).
    N, H, W = 2, 12, 20
    focal_x, focal_y = 20.0, 22.0
    camera_poses = jax.random.normal(key, (N, 3, 4), dtype=jnp.float32)

    rays_o, rays_d, view_dirs = camera_ray_generator(
        camera_poses, H, W, focal_x, focal_y)
    jax.block_until_ready((rays_o, rays_d, view_dirs))

    # Pure-JAX reference replicating the PyTorch forward pass exactly.
    cx, cy = 0.5 * W, 0.5 * H
    ii, jj = jnp.meshgrid(jnp.arange(W, dtype=jnp.float32),
                          jnp.arange(H, dtype=jnp.float32), indexing="ij")  # (W, H)
    dirs_wh3 = jnp.stack([(ii - cx) / focal_x,
                          -(jj - cy) / focal_y,
                          -jnp.ones_like(ii)], axis=-1)                      # (W, H, 3)
    rd_whnr = jnp.einsum("whc,nrc->whnr", dirs_wh3, camera_poses[:, :, :3])
    ref_rd = jnp.transpose(rd_whnr, (2, 3, 1, 0))                            # (N, 3, H, W)
    ref_ro = jnp.broadcast_to(camera_poses[:, :, 3][:, :, None, None],
                              ref_rd.shape)
    ref_vd = ref_rd / jnp.linalg.norm(ref_rd, axis=1, keepdims=True)

    assert rays_o.shape == (N, 3, H, W)
    assert rays_d.shape == (N, 3, H, W)
    assert view_dirs.shape == (N, 3, H, W)
    assert jnp.allclose(rays_d, ref_rd, atol=1e-5, rtol=1e-5)
    assert jnp.allclose(rays_o, ref_ro, atol=1e-5, rtol=1e-5)
    assert jnp.allclose(view_dirs, ref_vd, atol=1e-5, rtol=1e-5)

    print("KERNEL_OK")
</pallas_src>

<mosaic_0001>
module attributes {stable_mosaic.version = 11 : i64} {
  func.func @_camera_ray_kernel(%arg0: i32, %arg1: i32, %arg2: memref<24xf32, #tpu.memory_space<smem>>, %arg3: memref<2xf32, #tpu.memory_space<smem>>, %arg4: memref<1x3x8x128xf32, #tpu.memory_space<vmem>>, %arg5: memref<1x3x8x128xf32, #tpu.memory_space<vmem>>) attributes {dimension_semantics = [#tpu.dimension_semantics<parallel>, #tpu.dimension_semantics<parallel>], iteration_bounds = array<i64: 2, 1>, scalar_prefetch = 0 : i64, scratch_operands = 0 : i64, tpu.core_type = #tpu.core_type<tc>, window_params = [{transform_indices = @transform_0, window_bounds = array<i64: 24>}, {transform_indices = @transform_1, window_bounds = array<i64: 2>}, {transform_indices = @transform_2, window_bounds = array<i64: 1, 3, 8, 128>}, {transform_indices = @transform_3, window_bounds = array<i64: 1, 3, 8, 128>}]} {
    %c12_i32 = arith.constant 12 : i32
    %0 = arith.muli %arg0, %c12_i32 : i32
    %c2_i32 = arith.constant 2 : i32
    %1 = arith.muli %c2_i32, %arg1 : i32
    %2 = arith.index_cast %1 : i32 to index
    %3 = memref.load %arg3[%2] : memref<2xf32, #tpu.memory_space<smem>>
    %c2_i32_0 = arith.constant 2 : i32
    %4 = arith.muli %c2_i32_0, %arg1 : i32
    %c1_i32 = arith.constant 1 : i32
    %5 = arith.addi %4, %c1_i32 : i32
    %6 = arith.index_cast %5 : i32 to index
    %7 = memref.load %arg3[%6] : memref<2xf32, #tpu.memory_space<smem>>
    %8 = tpu.iota {dimensions = array<i32: 0>} : vector<8x128xi32>
    %c128_i32 = arith.constant 128 : i32
    %9 = vector.broadcast %c128_i32 : i32 to vector<8x128xi32>
    %10 = arith.muli %8, %9 : vector<8x128xi32>
    %11 = tpu.iota {dimensions = array<i32: 1>} : vector<8x128xi32>
    %12 = arith.addi %10, %11 : vector<8x128xi32>
    %13 = arith.sitofp %12 : vector<8x128xi32> to vector<8x128xf32>
    %14 = vector.broadcast %7 : f32 to vector<8x128xf32>
    %15 = arith.addf %14, %13 : vector<8x128xf32>
    %cst = arith.constant 5.000000e-01 : f32
    %16 = vector.broadcast %cst : f32 to vector<8x128xf32>
    %17 = arith.addf %15, %16 : vector<8x128xf32>
    %cst_1 = arith.constant 5.000000e-02 : f32
    %18 = vector.broadcast %cst_1 : f32 to vector<8x128xf32>
    %19 = arith.mulf %17, %18 : vector<8x128xf32>
    %20 = math.floor %19 : vector<8x128xf32>
    %cst_2 = arith.constant 2.000000e+01 : f32
    %21 = vector.broadcast %cst_2 : f32 to vector<8x128xf32>
    %22 = arith.mulf %20, %21 : vector<8x128xf32>
    %23 = arith.subf %15, %22 : vector<8x128xf32>
    %24 = vector.broadcast %3 : f32 to vector<8x128xf32>
    %25 = arith.addf %24, %20 : vector<8x128xf32>
    %cst_3 = arith.constant 1.000000e+01 : f32
    %26 = vector.broadcast %cst_3 : f32 to vector<8x128xf32>
    %27 = arith.subf %23, %26 : vector<8x128xf32>
    %cst_4 = arith.constant 5.000000e-02 : f32
    %28 = vector.broadcast %cst_4 : f32 to vector<8x128xf32>
    %29 = arith.mulf %27, %28 : vector<8x128xf32>
    %cst_5 = arith.constant 6.000000e+00 : f32
    %30 = vector.broadcast %cst_5 : f32 to vector<8x128xf32>
    %31 = arith.subf %30, %25 : vector<8x128xf32>
    %cst_6 = arith.constant 0.0454545468 : f32
    %32 = vector.broadcast %cst_6 : f32 to vector<8x128xf32>
    %33 = arith.mulf %31, %32 : vector<8x128xf32>
    %c0_i32 = arith.constant 0 : i32
    %34 = arith.addi %0, %c0_i32 : i32
    %35 = arith.index_cast %34 : i32 to index
    %36 = memref.load %arg2[%35] : memref<24xf32, #tpu.memory_space<smem>>
    %37 = vector.broadcast %36 : f32 to vector<8x128xf32>
    %38 = arith.mulf %37, %29 : vector<8x128xf32>
    %c1_i32_7 = arith.constant 1 : i32
    %39 = arith.addi %0, %c1_i32_7 : i32
    %40 = arith.index_cast %39 : i32 to index
    %41 = memref.load %arg2[%40] : memref<24xf32, #tpu.memory_space<smem>>
    %42 = vector.broadcast %41 : f32 to vector<8x128xf32>
    %43 = arith.mulf %42, %33 : vector<8x128xf32>
    %44 = arith.addf %38, %43 : vector<8x128xf32>
    %c2_i32_8 = arith.constant 2 : i32
    %45 = arith.addi %0, %c2_i32_8 : i32
    %46 = arith.index_cast %45 : i32 to index
    %47 = memref.load %arg2[%46] : memref<24xf32, #tpu.memory_space<smem>>
    %48 = vector.broadcast %47 : f32 to vector<8x128xf32>
    %49 = arith.subf %44, %48 : vector<8x128xf32>
    %c4_i32 = arith.constant 4 : i32
    %50 = arith.addi %0, %c4_i32 : i32
    %51 = arith.index_cast %50 : i32 to index
    %52 = memref.load %arg2[%51] : memref<24xf32, #tpu.memory_space<smem>>
    %53 = vector.broadcast %52 : f32 to vector<8x128xf32>
    %54 = arith.mulf %53, %29 : vector<8x128xf32>
    %c5_i32 = arith.constant 5 : i32
    %55 = arith.addi %0, %c5_i32 : i32
    %56 = arith.index_cast %55 : i32 to index
    %57 = memref.load %arg2[%56] : memref<24xf32, #tpu.memory_space<smem>>
    %58 = vector.broadcast %57 : f32 to vector<8x128xf32>
    %59 = arith.mulf %58, %33 : vector<8x128xf32>
    %60 = arith.addf %54, %59 : vector<8x128xf32>
    %c6_i32 = arith.constant 6 : i32
    %61 = arith.addi %0, %c6_i32 : i32
    %62 = arith.index_cast %61 : i32 to index
    %63 = memref.load %arg2[%62] : memref<24xf32, #tpu.memory_space<smem>>
    %64 = vector.broadcast %63 : f32 to vector<8x128xf32>
    %65 = arith.subf %60, %64 : vector<8x128xf32>
    %c8_i32 = arith.constant 8 : i32
    %66 = arith.addi %0, %c8_i32 : i32
    %67 = arith.index_cast %66 : i32 to index
    %68 = memref.load %arg2[%67] : memref<24xf32, #tpu.memory_space<smem>>
    %69 = vector.broadcast %68 : f32 to vector<8x128xf32>
    %70 = arith.mulf %69, %29 : vector<8x128xf32>
    %c9_i32 = arith.constant 9 : i32
    %71 = arith.addi %0, %c9_i32 : i32
    %72 = arith.index_cast %71 : i32 to index
    %73 = memref.load %arg2[%72] : memref<24xf32, #tpu.memory_space<smem>>
    %74 = vector.broadcast %73 : f32 to vector<8x128xf32>
    %75 = arith.mulf %74, %33 : vector<8x128xf32>
    %76 = arith.addf %70, %75 : vector<8x128xf32>
    %c10_i32 = arith.constant 10 : i32
    %77 = arith.addi %0, %c10_i32 : i32
    %78 = arith.index_cast %77 : i32 to index
    %79 = memref.load %arg2[%78] : memref<24xf32, #tpu.memory_space<smem>>
    %80 = vector.broadcast %79 : f32 to vector<8x128xf32>
    %81 = arith.subf %76, %80 : vector<8x128xf32>
    %c0 = arith.constant 0 : index
    %c0_9 = arith.constant 0 : index
    %c0_10 = arith.constant 0 : index
    %c0_11 = arith.constant 0 : index
    %82 = vector.load %arg4[%c0, %c0_9, %c0_10, %c0_11] : memref<1x3x8x128xf32, #tpu.memory_space<vmem>>, vector<1x1x8x128xf32>
    %83 = vector.shape_cast %82 : vector<1x1x8x128xf32> to vector<8x128xf32>
    %84 = vector.shape_cast %49 : vector<8x128xf32> to vector<1x1x8x128xf32>
    tpu.vector_store %arg4[%c0, %c0_9, %c0_10, %c0_11], %84 {strides = array<i32>} : memref<1x3x8x128xf32, #tpu.memory_space<vmem>>, vector<1x1x8x128xf32>,
    %c0_12 = arith.constant 0 : index
    %c1 = arith.constant 1 : index
    %c0_13 = arith.constant 0 : index
    %c0_14 = arith.constant 0 : index
    %85 = vector.load %arg4[%c0_12, %c1, %c0_13, %c0_14] : memref<1x3x8x128xf32, #tpu.memory_space<vmem>>, vector<1x1x8x128xf32>
    %86 = vector.shape_cast %85 : vector<1x1x8x128xf32> to vector<8x128xf32>
    %87 = vector.shape_cast %65 : vector<8x128xf32> to vector<1x1x8x128xf32>
    tpu.vector_store %arg4[%c0_12, %c1, %c0_13, %c0_14], %87 {strides = array<i32>} : memref<1x3x8x128xf32, #tpu.memory_space<vmem>>, vector<1x1x8x128xf32>,
    %c0_15 = arith.constant 0 : index
    %c2 = arith.constant 2 : index
    %c0_16 = arith.constant 0 : index
    %c0_17 = arith.constant 0 : index
    %88 = vector.load %arg4[%c0_15, %c2, %c0_16, %c0_17] : memref<1x3x8x128xf32, #tpu.memory_space<vmem>>, vector<1x1x8x128xf32>
    %89 = vector.shape_cast %88 : vector<1x1x8x128xf32> to vector<8x128xf32>
    %90 = vector.shape_cast %81 : vector<8x128xf32> to vector<1x1x8x128xf32>
    tpu.vector_store %arg4[%c0_15, %c2, %c0_16, %c0_17], %90 {strides = array<i32>} : memref<1x3x8x128xf32, #tpu.memory_space<vmem>>, vector<1x1x8x128xf32>,
    %91 = arith.mulf %49, %49 : vector<8x128xf32>
    %92 = arith.mulf %65, %65 : vector<8x128xf32>
    %93 = arith.addf %91, %92 : vector<8x128xf32>
    %94 = arith.mulf %81, %81 : vector<8x128xf32>
    %95 = arith.addf %93, %94 : vector<8x128xf32>
    %96 = math.rsqrt %95 : vector<8x128xf32>
    %97 = arith.mulf %49, %96 : vector<8x128xf32>
    %c0_18 = arith.constant 0 : index
    %c0_19 = arith.constant 0 : index
    %c0_20 = arith.constant 0 : index
    %c0_21 = arith.constant 0 : index
    %98 = vector.load %arg5[%c0_18, %c0_19, %c0_20, %c0_21] : memref<1x3x8x128xf32, #tpu.memory_space<vmem>>, vector<1x1x8x128xf32>
    %99 = vector.shape_cast %98 : vector<1x1x8x128xf32> to vector<8x128xf32>
    %100 = vector.shape_cast %97 : vector<8x128xf32> to vector<1x1x8x128xf32>
    tpu.vector_store %arg5[%c0_18, %c0_19, %c0_20, %c0_21], %100 {strides = array<i32>} : memref<1x3x8x128xf32, #tpu.memory_space<vmem>>, vector<1x1x8x128xf32>,
    %101 = arith.mulf %65, %96 : vector<8x128xf32>
    %c0_22 = arith.constant 0 : index
    %c1_23 = arith.constant 1 : index
    %c0_24 = arith.constant 0 : index
    %c0_25 = arith.constant 0 : index
    %102 = vector.load %arg5[%c0_22, %c1_23, %c0_24, %c0_25] : memref<1x3x8x128xf32, #tpu.memory_space<vmem>>, vector<1x1x8x128xf32>
    %103 = vector.shape_cast %102 : vector<1x1x8x128xf32> to vector<8x128xf32>
    %104 = vector.shape_cast %101 : vector<8x128xf32> to vector<1x1x8x128xf32>
    tpu.vector_store %arg5[%c0_22, %c1_23, %c0_24, %c0_25], %104 {strides = array<i32>} : memref<1x3x8x128xf32, #tpu.memory_space<vmem>>, vector<1x1x8x128xf32>,
    %105 = arith.mulf %81, %96 : vector<8x128xf32>
    %c0_26 = arith.constant 0 : index
    %c2_27 = arith.constant 2 : index
    %c0_28 = arith.constant 0 : index
    %c0_29 = arith.constant 0 : index
    %106 = vector.load %arg5[%c0_26, %c2_27, %c0_28, %c0_29] : memref<1x3x8x128xf32, #tpu.memory_space<vmem>>, vector<1x1x8x128xf32>
    %107 = vector.shape_cast %106 : vector<1x1x8x128xf32> to vector<8x128xf32>
    %108 = vector.shape_cast %105 : vector<8x128xf32> to vector<1x1x8x128xf32>
    tpu.vector_store %arg5[%c0_26, %c2_27, %c0_28, %c0_29], %108 {strides = array<i32>} : memref<1x3x8x128xf32, #tpu.memory_space<vmem>>, vector<1x1x8x128xf32>,
    return
  }
  func.func @transform_0(%arg0: i32, %arg1: i32) -> i32 {
    %c0_i32 = arith.constant 0 : i32
    %c0_i32_0 = arith.constant 0 : i32
    return %c0_i32 : i32
  }
  func.func @transform_1(%arg0: i32, %arg1: i32) -> i32 {
    %c0_i32 = arith.constant 0 : i32
    %c0_i32_0 = arith.constant 0 : i32
    return %c0_i32 : i32
  }
  func.func @transform_2(%arg0: i32, %arg1: i32) -> (i32, i32, i32, i32) {
    %c0_i32 = arith.constant 0 : i32
    %c0_i32_0 = arith.constant 0 : i32
    %c0_i32_1 = arith.constant 0 : i32
    return %arg0, %c0_i32, %arg1, %c0_i32_0 : i32, i32, i32, i32
  }
  func.func @transform_3(%arg0: i32, %arg1: i32) -> (i32, i32, i32, i32) {
    %c0_i32 = arith.constant 0 : i32
    %c0_i32_0 = arith.constant 0 : i32
    %c0_i32_1 = arith.constant 0 : i32
    return %arg0, %c0_i32, %arg1, %c0_i32_0 : i32, i32, i32, i32
  }
}

</mosaic_0001>

<bundles_post_ra>
// kernel: tpu_custom_call.1
= control target key start
LH: loop header
LB: loop body
LE: loop exit
PB: predicated region body
PF: predicated region fallthrough
CT: control target
= control target key end

     0   :  { %s941_s0 = inlined_call_operand.hbm [shape: f32[24], index: 0, kind: input, shape index: {}]   ;;  %s942_s1 = inlined_call_operand.vmem [shape: f32[2], index: 1, kind: input, shape index: {}]   ;;  %s943_s2 = inlined_call_operand.hbm [shape: f32[2,3,8,128], index: 2, kind: output, shape index: {0}]   ;;  %s944_s3 = inlined_call_operand.hbm [shape: f32[2,3,8,128], index: 3, kind: output, shape index: {1}]  }
   0x1   :  { %947 = sst [smem:[#allocation15_spill]] %s941_s0 }
   0x2   :  { %948 = sst [smem:[#allocation16_spill]] %s942_s1 }
   0x3   :  { %9 = vsyncpa [#allocation4], 0 }
   0x4   :  { %10 = vsyncpa [#allocation5], 0 }
   0x5   :  { %11 = vsyncpa [#allocation3], 0 }
   0x6   :  { %13 = vsyncpa [#allocation3 + $0x1], 0 }
   0x7   :  { %14 = vsyncpa [#allocation9], 0 }
   0x8   :  { %16 = vsyncpa [#allocation9 + $0x1], 0  ;;  %s718_s12 = smov 0   ;;  %s720_s13 = smov 0  }
   0x9   :  { %s722_s14 = smov 0   ;;  %s724_s15 = smov 0  }
   0xa   :  { %s726_s16 = smov 0   ;;  %s728_s17 = smov 0  }
   0xb LB: > { %s438_s18 = sadd.s32 4294967295, %s690_s17   ;;  %s439_s19 = sadd.s32 4294967294, %s690_s17   ;;  %s690_s17 = sphi %s728_s17, %s22_s17   ;;  %s686_s16 = sphi %s726_s16, %s964_s16   ;;  %s682_s15 = sphi %s724_s15, %s963_s15   ;;  %s678_s14 = sphi %s722_s14, %s962_s14   ;;  %s674_s13 = sphi %s720_s13, %s961_s13   ;;  %s670_s12 = sphi %s718_s12, %s960_s12  }
   0xc   : > { %s34_s20 = sadd.s32 1, %s686_s16  ;;  %s85_s21 = sadd.s32 1, %s678_s14 }
   0xd   : > { %p36_p0 = scmp.ge.s32.totalorder %s34_s20, 2  ;;  %p95_p1 = scmp.ne.s32.totalorder %s678_s14, %s674_s13 }
   0xe   : > { %p96_p2 = scmp.eq.s32.totalorder %s438_s18, 1  ;;  %p101_p3 = scmp.ne.s32.totalorder %s674_s13, %s670_s12 }
   0xf   : > { %s966_s20 = smov (%p36_p0, %s34_s20), 0  ;;  %p102_p5 = scmp.eq.s32.totalorder %s439_s19, 1 }
  0x10   : > { %949 = sst [smem:[#allocation14_spill]] %s966_s20  ;;  %p758_p4 = por %p96_p2, %p95_p1 }
  0x11   : > { %s80_s23 = ssub.s32 %s686_s16, %s966_s20  ;;  %p440_p6 = scmp.ge.s32.totalorder %s690_s17, 1 }
  0x12   : > { %s950_s22 = scalar_select %p758_p4, 1, 0 }
  0x13   : > { %p83_p7 = scmp.eq.s32.totalorder %s80_s23, 0  ;;  %p765_p8 = por %p102_p5, %p101_p3 }
  0x14   : > { %p137_p9 = scmp.lt.s32.totalorder %s690_s17, 3  ;;  %p777_p11 = scmp.eq.s32.totalorder %s438_s18, 0 }
  0x15   : > { %s951_s24 = scalar_select %p765_p8, 1, 0 }
  0x16   : > { %s771_s25 = scalar_select %p83_p7, %s678_s14, %s85_s21  }
  0x17   : > { %p773_p10 = pnand %p440_p6, %p137_p9  ;;  %s954_s1 = sld [smem:[#allocation16_spill]] }
  0x18   : > { %s956_s0 = sld [smem:[#allocation15_spill]] }
  0x19   : > { %p471_p12 = pneg %p773_p10 }
  0x1b   : > { %p788_p13 = pnand %p777_p11, %p471_p12 }
  0x1d   : > { %s159_s30 = sshll.u32 %s954_s1, 4  ;;  %p546_p1 = pneg %p788_p13  ;;  %s160_s30 = int_to_ptr.vmem [resolvable:$true] %s159_s30 }
  0x1e   : > { %s544_s7 = scalar_lea.hbm %s956_s0, 16 }
  0x1f   : > { %p545_p0 = scmp.ne.s32.totalorder %s956_s0, %s544_s7  ;;  %p551_p5 = scmp.lt.u32.totalorder %s544_s7, %s956_s0 }
  0x21   : > { %p547_p2 = pnand %p546_p1, %p545_p0 }
  0x23   : > { %p548_p3 = pneg %p547_p2 }
  0x25   : > { %p553_p6 = pnand %p551_p5, %p548_p3 }
  0x27   : > { %556 = shalt.err (!%p553_p6)
}
  0x28   : > { %s692_s18 = smov [#allocation2]   ;;  %s557_s23 = scalar_lea.vmem %s160_s30, 16 }
  0x29   : > { %474 = dma.hbm_to_smem (!%p788_p13), %s956_s0, 16, %s692_s18, [#allocation4]  }
  0x2a   : > { %p558_p7 = scmp.ne.s32.totalorder %s160_s30, %s557_s23  ;;  %p565_p8 = scmp.lt.s32.totalorder %s160_s30, %s160_s30 }
  0x2b   : > { %p566_p0 = scmp.lt.s32.totalorder %s557_s23, %s557_s23 }
  0x2c   : > { %p560_p9 = pnand %p558_p7, %p546_p1 }
  0x2d   : > { %p567_p2 = por %p566_p0, %p565_p8 }
  0x2e   : > { %p561_p12 = pneg %p560_p9 }
  0x30   : > { %p568_p4 = pnand %p567_p2, %p561_p12 }
  0x32   : > { %571 = shalt.err (!%p568_p4)
}
  0x33   : > { %s693_s28 = smov [#allocation6]   ;;  %172 = sbr.rel (%p773_p10) target bundleno = 141 (0x8d), region = 28 }
  0x34   : > { %477 = dma.vmem_to_smem (!%p788_p13), %s160_s30, 16, %s693_s28, [#allocation5]  }
  0x3a   : > { %653 = dma.done.wait (%p777_p11), [#allocation4], 16  }
  0x3b   : > { %655 = vsyncadd (%p777_p11), [#allocation4], 4294967280 }
  0x3c   : > { %657 = dma.done.wait (%p777_p11), [#allocation5], 16  }
  0x3d   : > { %659 = vsyncadd (%p777_p11), [#allocation5], 4294967280 }
  0x3e   : > { %182 = sfence }
  0x3f   : > { %v206_v0 = vlaneseq  ;;  %s446_s29 = sld [smem:[#allocation6 + $0x1]]  ;;  %s821_s26 = smul.u32 12, %s682_s15 }
  0x40   : > { %s203_s30 = sld [smem:[#allocation6]]  ;;  %s825_s4 = sand.u32 1, %s674_s13  }
  0x41   : > { %v207_v1 = vshrl.u32 %v206_v0, 7  ;;  %v210_v2 = vand.u32 127, %v206_v0  ;;  %s229_s27 = sadd.s32 1, %s821_s26  ;;  %s242_s5 = sadd.s32 5, %s821_s26 }
  0x42   : > { %s828_s6 = sld [smem:[#allocation2 + %s229_s27]]  ;;  %s255_s7 = sadd.s32 9, %s821_s26 }
  0x43   : > { %v208_v3 = vmul.u32 128, %v207_v1  ;;  %s238_s8 = sadd.s32 4, %s821_s26  ;;  %s251_s9 = sadd.s32 8, %s821_s26 }
  0x44   : > { %s243_s10 = sld [smem:[#allocation2 + %s242_s5]]  ;;  %s234_s19 = sadd.s32 2, %s821_s26 }
  0x45   : > { %v211_v4 = vadd.s32 %v210_v2, %v208_v3  ;;  %v213_v6 = vstv %s446_s29  ;;  %s256_s11 = sld [smem:[#allocation2 + %s255_s7]]  ;;  %s247_s28 = sadd.s32 6, %s821_s26 }
  0x46   : > { %s226_s18 = sld [smem:[#allocation2 + %s821_s26]]  ;;  %v220_v10 = vstv %s203_s30  ;;  %s260_s29 = sadd.s32 10, %s821_s26 }
  0x47   : > { %v212_v5 = vcvt.s32.f32 %v211_v4  ;;  %s239_s21 = sld [smem:[#allocation2 + %s238_s8]]  ;;  %s456_s0 = smul.u32 24, %s825_s4 }
  0x48   : > { %s252_s23 = sld [smem:[#allocation2 + %s251_s9]]  ;;  %v231_v16 = vstv %s828_s6  ;;  %s457_s5 = smul.u32 384, %s682_s15 }
  0x49   : > { %v214_v7 = vadd.f32 %v213_v6, %v212_v5  ;;  %s838_s27 = sld [smem:[#allocation2 + %s234_s19]]  ;;  %s193_s26 = scalar_lea.vmem [#allocation7], %s456_s0 }
  0x4a   : > { %s248_s1 = sld [smem:[#allocation2 + %s247_s28]]  ;;  %v244_v17 = vstv %s243_s10  ;;  %s303_s30 = sshll.u32 %s193_s26, 4  ;;  %s845_s30 = int_to_ptr.vmem [resolvable:$true] %s303_s30 }
  0x4b   : > { %v215_v8 = vadd.f32 0.5, %v214_v7  ;;  %s261_s20 = sld [smem:[#allocation2 + %s260_s29]]  ;;  %v257_v18 = vstv %s256_s11  ;;  %s852_s8 = scalar_lea.hbm %s943_s2, %s457_s5 }
  0x4c   : > { %v227_v21 = vstv %s226_s18  ;;  %p957_p8 = scmp.ne.s32.totalorder %s950_s22, 0  ;;  %s694_s9 = smov [#allocation7]  }
  0x4d   : > { %v216_v9 = vmul.f32 0.05, %v215_v8  ;;  %v240_v22 = vstv %s239_s21  ;;  %s576_s10 = sshll.u32 %s694_s9, 4  ;;  %s577_s10 = int_to_ptr.vmem [resolvable:$false] %s576_s10 }
  0x4e   : > { %v253_v23 = vstv %s252_s23  ;;  %s578_s11 = scalar_lea.vmem %s577_s10, 768  ;;  %p579_p13 = scmp.lt.s32.totalorder %s845_s30, %s577_s10 }
  0x4f   : > { %v217_v11 = vfloor.f32 %v216_v9  ;;  %v236_v31 = vstv %s838_s27 }
  0x50   : > { %v249_v32 = vstv %s248_s1  ;;  %s284_s1 = scalar_lea.sflag [#allocation3], %s825_s4 }
  0x51   : > { %v218_v12 = vmul.f32 20.0, %v217_v11  ;;  %v221_v13 = vadd.f32 %v220_v10, %v217_v11  ;;  %v262_v33 = vstv %s261_s20  ;;  %s572_s20 = scalar_lea.vmem %s845_s30, 384 }
  0x52   : > { %p573_p4 = scmp.ne.s32.totalorder %s845_s30, %s572_s20  ;;  %p580_p1 = scmp.lt.s32.totalorder %s578_s11, %s572_s20 }
  0x53   : > { %v219_v14 = vsub.f32 %v214_v7, %v218_v12  ;;  %v224_v15 = vsub.f32 6.0, %v221_v13 }
  0x54   : > { %p574_p10 = pnand %p573_p4, %p957_p8  ;;  %p581_p3 = por %p580_p1, %p579_p13 }
  0x55   : > { %v447_v19 = vadd.f32 -10.0, %v219_v14  ;;  %v225_v20 = vmul.f32 0.045454547, %v224_v15 }
  0x56   : > { %p575_p11 = pneg %p574_p10 }
  0x57   : > { %v223_v24 = vmul.f32 0.05, %v447_v19  ;;  %v232_v25 = vmul.f32 %v231_v16, %v225_v20  ;;  %v245_v26 = vmul.f32 %v244_v17, %v225_v20  ;;  %v258_v27 = vmul.f32 %v257_v18, %v225_v20 }
  0x58   : > { %p582_p5 = pnand %p581_p3, %p575_p11 }
  0x59   : > { %v228_v28 = vmul.f32 %v227_v21, %v223_v24  ;;  %v241_v29 = vmul.f32 %v240_v22, %v223_v24  ;;  %v254_v30 = vmul.f32 %v253_v23, %v223_v24 }
  0x5b   : > { %v233_v34 = vadd.f32 %v232_v25, %v228_v28  ;;  %v246_v35 = vadd.f32 %v245_v26, %v241_v29  ;;  %v259_v36 = vadd.f32 %v258_v27, %v254_v30 }
  0x5d   : > { %v237_v37 = vsub.f32 %v233_v34, %v236_v31  ;;  %v250_v38 = vsub.f32 %v246_v35, %v249_v32  ;;  %v263_v39 = vsub.f32 %v259_v36, %v262_v33 }
  0x5f   : > { %264 = vst [vmem:[%s193_s26] sm:$0xff] %v237_v37  ;;  %v269_v40 = vmul.f32 %v237_v37, %v237_v37  ;;  %448 = vst [vmem:[%s193_s26 + $0x8] sm:$0xff] %v250_v38  ;;  %v270_v41 = vmul.f32 %v250_v38, %v250_v38  ;;  %v272_v42 = vmul.f32 %v263_v39, %v263_v39 }
  0x60   : > { %449 = vst [vmem:[%s193_s26 + $0x10] sm:$0xff] %v263_v39 }
  0x61   : > { %585 = shalt.err (!%p582_p5)
}
  0x62   : > { %s586_s18 = scalar_lea.hbm %s852_s8, 384  ;;  %s590_s23 = scalar_lea.hbm %s943_s2, 768 }
  0x63   : > { %p587_p6 = scmp.ne.s32.totalorder %s852_s8, %s586_s18  ;;  %p591_p12 = scmp.lt.u32.totalorder %s852_s8, %s943_s2 }
  0x64   : > { %p592_p0 = scmp.lt.u32.totalorder %s590_s23, %s586_s18  ;;  %p594_p4 = scmp.lt.u32.totalorder %s586_s18, %s852_s8 }
  0x65   : > { %p588_p7 = pnand %p587_p6, %p957_p8 }
  0x66   : > { %p593_p2 = por %p592_p0, %p591_p12 }
  0x67   : > { %p589_p9 = pneg %p588_p7 }
  0x68   : > { %p595_p10 = por %p594_p4, %p593_p2 }
  0x6a   : > { %p596_p11 = pnand %p595_p10, %p589_p9 }
  0x6c   : > { %599 = shalt.err (!%p596_p11)
}
  0x6d   : > { %s695_s27 = smov 128   ;;  %s696_s26 = smov 8   ;;  %v271_v43 = vadd.f32 %v270_v41, %v269_v40 }
  0x6e   : > { %467 = dma.vmem_to_hbm [thread:$0]  (%p957_p8), %s845_s30, 384, %s852_s8, %s284_s1, %s695_s27, %s695_s27, %s696_s26  }
  0x6f   : > { %v273_v44 = vadd.f32 %v272_v42, %v271_v43  ;;  %s200_s6 = scalar_lea.vmem [#allocation8], %s456_s0  ;;  %s890_s30 = scalar_lea.hbm %s944_s3, %s457_s5 }
  0x70   : > { %s320_s7 = sshll.u32 %s200_s6, 4  ;;  %s289_s0 = scalar_lea.sflag [#allocation9], %s825_s4  ;;  %s883_s7 = int_to_ptr.vmem [resolvable:$true] %s320_s7 }
  0x71   : > { %542 = vrsqrt.f32 %v273_v44  ;;  %s600_s8 = scalar_lea.vmem %s883_s7, 384  ;;  %s697_s1 = smov [#allocation8]  }
  0x72   : > { %p601_p13 = scmp.ne.s32.totalorder %s883_s7, %s600_s8  ;;  %s604_s10 = sshll.u32 %s697_s1, 4  ;;  %s605_s10 = int_to_ptr.vmem [resolvable:$false] %s604_s10 }
  0x73   : > { %s606_s11 = scalar_lea.vmem %s605_s10, 768  ;;  %p607_p5 = scmp.lt.s32.totalorder %s883_s7, %s605_s10 }
  0x74   : > { %p602_p1 = pnand %p601_p13, %p957_p8  ;;  %p608_p6 = scmp.lt.s32.totalorder %s606_s11, %s600_s8 }
  0x76   : > { %p603_p3 = pneg %p602_p1  ;;  %p609_p7 = por %p608_p6, %p607_p5 }
  0x78   : > { %p610_p9 = pnand %p609_p7, %p603_p3 }
  0x7b   : > { %v543_v45 = vpop.eup %542 }
  0x7c   : > { %v275_v46 = vmul.f32 %v543_v45, %v237_v37  ;;  %v277_v47 = vmul.f32 %v543_v45, %v250_v38  ;;  %v280_v48 = vmul.f32 %v543_v45, %v263_v39 }
  0x7e   : > { %276 = vst [vmem:[%s200_s6] sm:$0xff] %v275_v46  ;;  %450 = vst [vmem:[%s200_s6 + $0x8] sm:$0xff] %v277_v47 }
  0x7f   : > { %451 = vst [vmem:[%s200_s6 + $0x10] sm:$0xff] %v280_v48 }
  0x80   : > { %613 = shalt.err (!%p610_p9)
}
  0x81   : > { %s614_s15 = scalar_lea.hbm %s890_s30, 384  ;;  %s618_s19 = scalar_lea.hbm %s944_s3, 768 }
  0x82   : > { %p615_p12 = scmp.ne.s32.totalorder %s890_s30, %s614_s15  ;;  %p619_p4 = scmp.lt.u32.totalorder %s890_s30, %s944_s3 }
  0x83   : > { %p620_p10 = scmp.lt.u32.totalorder %s618_s19, %s614_s15  ;;  %p622_p13 = scmp.lt.u32.totalorder %s614_s15, %s890_s30 }
  0x84   : > { %p616_p0 = pnand %p615_p12, %p957_p8 }
  0x85   : > { %p621_p11 = por %p620_p10, %p619_p4 }
  0x86   : > { %p617_p2 = pneg %p616_p0 }
  0x87   : > { %p623_p1 = por %p622_p13, %p621_p11 }
  0x89   : > { %p624_p3 = pnand %p623_p1, %p617_p2 }
  0x8b   : > { %627 = shalt.err (!%p624_p3)
}
  0x8c   : > { %468 = dma.vmem_to_hbm [thread:$0]  (%p957_p8), %s883_s7, 384, %s890_s30, %s289_s0, %s695_s27, %s695_s27, %s696_s26  }
  0x8d PF: > { %p489_p5 = scmp.ge.s32.totalorder %s690_s17, 2  ;;  %s335_s28 = sand.u32 1, %s670_s12  }
  0x8e   : > { %p958_p6 = scmp.ne.s32.totalorder %s951_s24, 0  ;;  %s336_s29 = scalar_lea.sflag [#allocation3], %s335_s28 }
  0x90   : > { %p479_p7 = pnand %p489_p5, %p958_p6 }
  0x92   : > { %661 = dma.done.wait (!%p479_p7), %s336_s29, 384  }
  0x93   : > { %663 = vsyncadd (!%p479_p7), %s336_s29, 4294966912  ;;  %s345_s22 = scalar_lea.sflag [#allocation9], %s335_s28 }
  0x94   : > { %665 = dma.done.wait (!%p479_p7), %s345_s22, 384  }
  0x95   : > { %667 = vsyncadd (!%p479_p7), %s345_s22, 4294966912  ;;  %s22_s17 = sadd.s32 1, %s690_s17   ;;  %s959_s4 = sld [smem:[#allocation14_spill]] }
  0x96   : > { %p19_p9 = scmp.ge.s32.totalorder %s22_s17, 4   ;;  %s960_s12 = smov %s674_s13 }
  0x97   : > { %s961_s13 = smov %s678_s14  ;;  %s962_s14 = smov %s771_s25 }
  0x98   : > { %s963_s15 = smov %s686_s16  ;;  %21 = sbr.rel (!%p19_p9) target bundleno = 11 (0xb), region = 91 }
  0x9b   : > { %s964_s16 = smov %s959_s4 }
  0x9f   :  { %350 = vsyncpa [#allocation3], 1 }
  0xa0   :  { %352 = vsyncpa [#allocation3 + $0x1], 1 }
  0xa1   :  { %353 = vsyncpa [#allocation9], 1 }
  0xa2   :  { %355 = vsyncpa [#allocation9 + $0x1], 1 }
  0xa3   :  { %356 = vsyncpa [#allocation4], 1 }
  0xa4   :  { %358 = vsyncpa [#allocation4 + $0x1], 1 }
  0xa5   :  { %359 = vsyncpa [#allocation5], 1 }
  0xa6   :  { %361 = vsyncpa [#allocation5 + $0x1], 1 }

</bundles_post_ra>
